<compile_context>
chip_gen: v7x
topology: tpu7x:2x2x1
jax: 0.10.0
libtpu: 0.0.40
codegen_flags: <defaults>
</compile_context>

<pallas_src>
import jax
import jax.numpy as jnp
import numpy as np
from jax.experimental import pallas as pl
from jax.experimental.pallas import tpu as pltpu


# ---------------------------- Pallas kernel ---------------------------------
def color_model_kernel(patch_ref, wconv_ref, bconv_ref, whead_ref, bhead_ref,
                       emb_ref, reg_ref, feat_acc):
    # patch_ref: (B, T, 128)  bf16 im2col tile of the padded image (lane-dense K)
    # wconv_ref: (128, C)     bf16 conv taps reshaped (kh,kw,cin -> rows), K padded to 128
    # bconv_ref: (1, C)       f32
    # whead_ref: (C, 2*E)     bf16 fused head (GAP 1/HW folded in): cols [0,E) embedding,
    #                         col E regression, rest 0
    # bhead_ref: (1, 2*E)     f32
    # emb_ref:   (B, E)       f32 L2-normalized embedding (written at final grid step)
    # reg_ref:   (B, E)       f32 lane-dense regression slab (col 0 is the regression)
    # feat_acc:  (B, C)       f32 scratch: global-average-pool partial sums
    s = pl.program_id(0)
    B, T, KP = patch_ref.shape
    C = wconv_ref.shape[1]
    E = emb_ref.shape[-1]

    @pl.when(s == 0)
    def _():
        feat_acc[...] = jnp.zeros_like(feat_acc)

    # 3x3 conv over this spatial tile as ONE K=128 bf16 MXU matmul (f32 accumulate).
    patches = patch_ref[...].reshape(B * T, KP)
    conv = jnp.dot(patches, wconv_ref[...], preferred_element_type=jnp.float32)
    conv = jnp.maximum(conv + bconv_ref[...], 0.0)              # bias + ReLU (f32 VPU)

    # Global-average-pool partial sums for this tile.
    feat_acc[...] += jnp.sum(conv.reshape(B, T, C), axis=1)

    @pl.when(s == pl.num_programs(0) - 1)
    def _():
        # GAP mean scale (1/HW) is folded into whead, so the raw sum goes straight
        # to the fused emb+reg matmul (bf16 relative precision is scale-invariant).
        feat = feat_acc[...].astype(jnp.bfloat16)
        head = (jnp.dot(feat, whead_ref[...], preferred_element_type=jnp.float32)
                + bhead_ref[...])
        emb = head[:, :E]
        reg = head[:, E:]
        # F.normalize(p=2, dim=1): x / max(||x||, 1e-12) == x * rsqrt(max(||x||^2, 1e-24))
        sumsq = jnp.sum(emb * emb, axis=1, keepdims=True)
        inv = jax.lax.rsqrt(jnp.maximum(sumsq, 1e-24))
        emb_ref[...] = emb * inv
        reg_ref[...] = reg                                      # col 0 = regression


# ---------------------------- tile picker ------------------------------------
def _pick_spatial_tile(hw, b, kp, budget_bytes=4 << 20):
    """Largest sublane-aligned divisor of HW whose bf16 patch tile fits the budget."""
    max_t = max(8, budget_bytes // (b * kp * 2))
    t = min(hw, max_t)
    t -= t % 8
    while t >= 8:
        if hw % t == 0:
            return t
        t -= 8
    raise ValueError("H*W must have a divisor that is a multiple of 8")


# ---------------------------- wrapper ----------------------------------------
def color_model_forward(x_nchw, params):
    """x_nchw: (B, 3, H, W) float32 (PyTorch layout). Returns (regression, embedding)."""
    w_conv, b_conv, w_cls, b_cls, w_emb, b_emb = params
    B, Cin, H, W = x_nchw.shape
    C = w_conv.shape[0]               # conv out channels / feature dim
    E = w_emb.shape[0]                # embedding width (128)
    HW = H * W
    K = 9 * Cin                       # real im2col depth (27)
    KP = 128                          # pad K to a full lane width

    T = _pick_spatial_tile(HW, B, KP)

    # ---- im2col in plain JAX: lane-dense (B, HW, 128) bf16 patch matrix ----
    x_nhwc = jnp.transpose(x_nchw, (0, 2, 3, 1))
    x_pad = jnp.pad(x_nhwc, ((0, 0), (1, 1), (1, 1), (0, 0)))    # SAME pad for 3x3
    taps = [x_pad[:, kh:kh + H, kw:kw + W, :] for kh in range(3) for kw in range(3)]
    patches = jnp.stack(taps, axis=3).reshape(B, HW, K)          # (b, hw, tap*Cin + cin)
    patches = jnp.pad(patches, ((0, 0), (0, 0), (0, KP - K))).astype(jnp.bfloat16)

    # conv weight OIHW -> (kh, kw, cin, cout) -> (K, C), pad K to 128, bf16
    w_k = jnp.transpose(w_conv, (2, 3, 1, 0)).reshape(K, C)
    w_k = jnp.pad(w_k, ((0, KP - K), (0, 0))).astype(jnp.bfloat16)
    bconv = b_conv.reshape(1, C).astype(jnp.float32)

    # fused head: columns [0, E) = embedding Linear, column E = regression Linear, rest 0.
    # GAP mean (1/HW) is folded into the weights: feat_sum @ (W/HW) + b == mean @ W + b.
    w_head = jnp.zeros((C, 2 * E), jnp.float32)
    w_head = w_head.at[:, :E].set(w_emb.T).at[:, E].set(w_cls[0])
    w_head = (w_head * (1.0 / HW)).astype(jnp.bfloat16)
    b_head = jnp.zeros((1, 2 * E), jnp.float32)
    b_head = b_head.at[0, :E].set(b_emb).at[0, E].set(b_cls[0])

    grid = (HW // T,)

    # TODO(synk): at production batch sizes add a leading "parallel" batch grid axis
    #             (batch tile a multiple of 8) so v7x's second TensorCore is used.
    emb, reg_full = pl.pallas_call(
        color_model_kernel,
        out_shape=(jax.ShapeDtypeStruct((B, E), jnp.float32),
                   jax.ShapeDtypeStruct((B, E), jnp.float32)),
        grid_spec=pltpu.PrefetchScalarGridSpec(
            num_scalar_prefetch=0,
            grid=grid,
            in_specs=[
                pl.BlockSpec((B, T, KP), lambda s: (0, s, 0)),   # streamed spatial tiles
                pl.BlockSpec((KP, C), lambda s: (0, 0)),
                pl.BlockSpec((1, C), lambda s: (0, 0)),
                pl.BlockSpec((C, 2 * E), lambda s: (0, 0)),
                pl.BlockSpec((1, 2 * E), lambda s: (0, 0)),
            ],
            out_specs=(
                pl.BlockSpec((B, E), lambda s: (0, 0)),          # resident across reduction
                pl.BlockSpec((B, E), lambda s: (0, 0)),
            ),
            scratch_shapes=[pltpu.VMEM((B, C), jnp.float32)],    # GAP accumulator
        ),
        compiler_params=pltpu.CompilerParams(
            dimension_semantics=("arbitrary",),                  # spatial axis is a reduction
            vmem_limit_bytes=32 * 1024 * 1024,                   # safe on v5e/v6e/v7x
        ),
    )(patches, w_k, bconv, w_head, b_head)

    return reg_full[:, :1], emb


# ---------------------------- pure-JAX reference ------------------------------
def color_model_reference(x_nchw, params):
    w_conv, b_conv, w_cls, b_cls, w_emb, b_emb = params
    y = jax.lax.conv_general_dilated(
        x_nchw, w_conv, window_strides=(1, 1), padding=((1, 1), (1, 1)),
        dimension_numbers=('NCHW', 'OIHW', 'NCHW'))
    y = jnp.maximum(y + b_conv[None, :, None, None], 0.0)
    feat = jnp.mean(y, axis=(2, 3))                       # (B, C)
    reg = feat @ w_cls.T + b_cls
    emb = feat @ w_emb.T + b_emb
    emb = emb / jnp.maximum(jnp.linalg.norm(emb, axis=1, keepdims=True), 1e-12)
    return reg, emb


# ---------------------------- main --------------------------------------------
if __name__ == "__main__":
    B, CIN, H, W = 2, 3, 16, 16
    C_FEAT = 128      # synthetic feature width (lane-aligned stand-in for the backbone's 1280)
    EMB = 128

    key = jax.random.PRNGKey(0)
    kx, k1, k2, k3, k4, k5, k6 = jax.random.split(key, 7)

    # deterministic parameter init (synthetic; shapes follow the module definition)
    w_conv = 0.1 * jax.random.normal(k1, (C_FEAT, CIN, 3, 3), jnp.float32)   # conv OIHW
    b_conv = 0.1 * jax.random.normal(k2, (C_FEAT,), jnp.float32)
    w_cls = 0.1 * jax.random.normal(k3, (1, C_FEAT), jnp.float32)            # Linear(C,1)
    b_cls = 0.1 * jax.random.normal(k4, (1,), jnp.float32)
    w_emb = 0.1 * jax.random.normal(k5, (EMB, C_FEAT), jnp.float32)          # Linear(C,128)
    b_emb = 0.1 * jax.random.normal(k6, (EMB,), jnp.float32)
    params = (w_conv, b_conv, w_cls, b_cls, w_emb, b_emb)

    # deterministic input (PyTorch NCHW convention), small shapes
    x = jax.random.normal(kx, (B, CIN, H, W), jnp.float32)

    reg, emb = color_model_forward(x, params)
    jax.block_until_ready((reg, emb))

    reg_ref, emb_ref = color_model_reference(x, params)
    # bf16 MXU inputs (f32 accumulation) vs an all-f32 reference -> relaxed tolerance.
    np.testing.assert_allclose(np.asarray(reg), np.asarray(reg_ref), rtol=2e-2, atol=2e-2)
    np.testing.assert_allclose(np.asarray(emb), np.asarray(emb_ref), rtol=2e-2, atol=2e-2)

    print("KERNEL_OK")
</pallas_src>

<mosaic_0001>
module attributes {stable_mosaic.version = 11 : i64} {
  func.func @color_model_kernel(%arg0: i32, %arg1: memref<2x256x128xbf16, #tpu.memory_space<vmem>>, %arg2: memref<128x128xbf16, #tpu.memory_space<vmem>>, %arg3: memref<1x128xf32, #tpu.memory_space<vmem>>, %arg4: memref<128x256xbf16, #tpu.memory_space<vmem>>, %arg5: memref<1x256xf32, #tpu.memory_space<vmem>>, %arg6: memref<2x128xf32, #tpu.memory_space<vmem>>, %arg7: memref<2x128xf32, #tpu.memory_space<vmem>>, %arg8: memref<2x128xf32, #tpu.memory_space<vmem>>) attributes {dimension_semantics = [#tpu.dimension_semantics<arbitrary>], iteration_bounds = array<i64: 1>, scalar_prefetch = 0 : i64, scratch_operands = 1 : i64, tpu.core_type = #tpu.core_type<tc>, window_params = [{transform_indices = @transform_0, window_bounds = array<i64: 2, 256, 128>}, {pipeline_mode = #tpu.pipeline_mode<synchronous>, transform_indices = @transform_1, window_bounds = array<i64: 128, 128>}, {pipeline_mode = #tpu.pipeline_mode<synchronous>, transform_indices = @transform_2, window_bounds = array<i64: 1, 128>}, {pipeline_mode = #tpu.pipeline_mode<synchronous>, transform_indices = @transform_3, window_bounds = array<i64: 128, 256>}, {pipeline_mode = #tpu.pipeline_mode<synchronous>, transform_indices = @transform_4, window_bounds = array<i64: 1, 256>}, {pipeline_mode = #tpu.pipeline_mode<synchronous>, transform_indices = @transform_5, window_bounds = array<i64: 2, 128>}, {pipeline_mode = #tpu.pipeline_mode<synchronous>, transform_indices = @transform_6, window_bounds = array<i64: 2, 128>}]} {
    %c0_i32 = arith.constant 0 : i32
    %0 = arith.cmpi eq, %arg0, %c0_i32 : i32
    %1 = arith.extui %0 : i1 to i32
    %c0_i32_0 = arith.constant 0 : i32
    %2 = arith.cmpi ne, %1, %c0_i32_0 : i32
    scf.if %2 {
      %cst_15 = arith.constant 0.000000e+00 : f32
      %20 = vector.broadcast %cst_15 : f32 to vector<2x128xf32>
      %c0_16 = arith.constant 0 : index
      %c0_17 = arith.constant 0 : index
      %21 = vector.load %arg8[%c0_16, %c0_17] : memref<2x128xf32, #tpu.memory_space<vmem>>, vector<2x128xf32>
      tpu.vector_store %arg8[%c0_16, %c0_17], %20 {strides = array<i32>} : memref<2x128xf32, #tpu.memory_space<vmem>>, vector<2x128xf32>,
    } else {
    }
    %c0 = arith.constant 0 : index
    %c0_1 = arith.constant 0 : index
    %c0_2 = arith.constant 0 : index
    %3 = vector.load %arg1[%c0, %c0_1, %c0_2] : memref<2x256x128xbf16, #tpu.memory_space<vmem>>, vector<2x256x128xbf16>
    %4 = vector.shape_cast %3 : vector<2x256x128xbf16> to vector<512x128xbf16>
    %c0_3 = arith.constant 0 : index
    %c0_4 = arith.constant 0 : index
    %5 = vector.load %arg2[%c0_3, %c0_4] : memref<128x128xbf16, #tpu.memory_space<vmem>>, vector<128x128xbf16>
    %cst = arith.constant dense<0.000000e+00> : vector<512x128xf32>
    %6 = tpu.matmul %4, %5, %cst {dimension_numbers = #tpu.dot_dimension_numbers<[1], [0], [0], [1], [0, 0, 1, 1], [], []>} : vector<512x128xbf16>, vector<128x128xbf16>, vector<512x128xf32> -> vector<512x128xf32>
    %c0_5 = arith.constant 0 : index
    %c0_6 = arith.constant 0 : index
    %7 = vector.load %arg3[%c0_5, %c0_6] : memref<1x128xf32, #tpu.memory_space<vmem>>, vector<1x128xf32>
    %8 = vector.broadcast %7 : vector<1x128xf32> to vector<512x128xf32>
    %9 = arith.addf %6, %8 : vector<512x128xf32>
    %cst_7 = arith.constant 0.000000e+00 : f32
    %10 = vector.broadcast %cst_7 : f32 to vector<512x128xf32>
    %11 = arith.maximumf %9, %10 : vector<512x128xf32>
    %c0_8 = arith.constant 0 : index
    %c0_9 = arith.constant 0 : index
    %12 = vector.load %arg8[%c0_8, %c0_9] : memref<2x128xf32, #tpu.memory_space<vmem>>, vector<2x128xf32>
    %13 = vector.shape_cast %11 : vector<512x128xf32> to vector<2x256x128xf32>
    %cst_10 = arith.constant dense<0.000000e+00> : vector<2x128xf32>
    %14 = vector.multi_reduction <add>, %13, %cst_10 [1] : vector<2x256x128xf32> to vector<2x128xf32>
    %15 = arith.addf %12, %14 : vector<2x128xf32>
    %c0_11 = arith.constant 0 : index
    %c0_12 = arith.constant 0 : index
    %16 = vector.load %arg8[%c0_11, %c0_12] : memref<2x128xf32, #tpu.memory_space<vmem>>, vector<2x128xf32>
    tpu.vector_store %arg8[%c0_11, %c0_12], %15 {strides = array<i32>} : memref<2x128xf32, #tpu.memory_space<vmem>>, vector<2x128xf32>,
    %c0_i32_13 = arith.constant 0 : i32
    %17 = arith.cmpi eq, %arg0, %c0_i32_13 : i32
    %18 = arith.extui %17 : i1 to i32
    %c0_i32_14 = arith.constant 0 : i32
    %19 = arith.cmpi ne, %18, %c0_i32_14 : i32
    scf.if %19 {
      %c0_15 = arith.constant 0 : index
      %c0_16 = arith.constant 0 : index
      %20 = vector.load %arg8[%c0_15, %c0_16] : memref<2x128xf32, #tpu.memory_space<vmem>>, vector<2x128xf32>
      %21 = arith.truncf %20 : vector<2x128xf32> to vector<2x128xbf16>
      %c0_17 = arith.constant 0 : index
      %c0_18 = arith.constant 0 : index
      %22 = vector.load %arg4[%c0_17, %c0_18] : memref<128x256xbf16, #tpu.memory_space<vmem>>, vector<128x256xbf16>
      %cst_19 = arith.constant dense<0.000000e+00> : vector<2x256xf32>
      %23 = tpu.matmul %21, %22, %cst_19 {dimension_numbers = #tpu.dot_dimension_numbers<[1], [0], [0], [1], [0, 0, 1, 1], [], []>} : vector<2x128xbf16>, vector<128x256xbf16>, vector<2x256xf32> -> vector<2x256xf32>
      %c0_20 = arith.constant 0 : index
      %c0_21 = arith.constant 0 : index
      %24 = vector.load %arg5[%c0_20, %c0_21] : memref<1x256xf32, #tpu.memory_space<vmem>>, vector<1x256xf32>
      %25 = vector.broadcast %24 : vector<1x256xf32> to vector<2x256xf32>
      %26 = arith.addf %23, %25 : vector<2x256xf32>
      %27 = vector.extract_strided_slice %26 {offsets = [0, 0], sizes = [2, 128], strides = [1, 1]} : vector<2x256xf32> to vector<2x128xf32>
      %28 = vector.extract_strided_slice %26 {offsets = [0, 128], sizes = [2, 128], strides = [1, 1]} : vector<2x256xf32> to vector<2x128xf32>
      %29 = arith.mulf %27, %27 : vector<2x128xf32>
      %cst_22 = arith.constant dense<0.000000e+00> : vector<2xf32>
      %30 = vector.multi_reduction <add>, %29, %cst_22 [1] : vector<2x128xf32> to vector<2xf32>
      %31 = vector.shape_cast %30 : vector<2xf32> to vector<2x1xf32>
      %cst_23 = arith.constant 1.000000e-24 : f32
      %32 = vector.broadcast %cst_23 : f32 to vector<2x1xf32>
      %33 = arith.maximumf %31, %32 : vector<2x1xf32>
      %34 = math.rsqrt %33 : vector<2x1xf32>
      %35 = vector.broadcast %34 : vector<2x1xf32> to vector<2x128xf32>
      %36 = arith.mulf %27, %35 : vector<2x128xf32>
      %c0_24 = arith.constant 0 : index
      %c0_25 = arith.constant 0 : index
      %37 = vector.load %arg6[%c0_24, %c0_25] : memref<2x128xf32, #tpu.memory_space<vmem>>, vector<2x128xf32>
      tpu.vector_store %arg6[%c0_24, %c0_25], %36 {strides = array<i32>} : memref<2x128xf32, #tpu.memory_space<vmem>>, vector<2x128xf32>,
      %c0_26 = arith.constant 0 : index
      %c0_27 = arith.constant 0 : index
      %38 = vector.load %arg7[%c0_26, %c0_27] : memref<2x128xf32, #tpu.memory_space<vmem>>, vector<2x128xf32>
      tpu.vector_store %arg7[%c0_26, %c0_27], %28 {strides = array<i32>} : memref<2x128xf32, #tpu.memory_space<vmem>>, vector<2x128xf32>,
    } else {
    }
    return
  }
  func.func @transform_0(%arg0: i32) -> (i32, i32, i32) {
    %c0_i32 = arith.constant 0 : i32
    %c0_i32_0 = arith.constant 0 : i32
    %c0_i32_1 = arith.constant 0 : i32
    return %c0_i32, %arg0, %c0_i32_0 : i32, i32, i32
  }
  func.func @transform_1(%arg0: i32) -> (i32, i32) {
    %c0_i32 = arith.constant 0 : i32
    %c0_i32_0 = arith.constant 0 : i32
    %c0_i32_1 = arith.constant 0 : i32
    return %c0_i32, %c0_i32_0 : i32, i32
  }
  func.func @transform_2(%arg0: i32) -> (i32, i32) {
    %c0_i32 = arith.constant 0 : i32
    %c0_i32_0 = arith.constant 0 : i32
    %c0_i32_1 = arith.constant 0 : i32
    return %c0_i32, %c0_i32_0 : i32, i32
  }
  func.func @transform_3(%arg0: i32) -> (i32, i32) {
    %c0_i32 = arith.constant 0 : i32
    %c0_i32_0 = arith.constant 0 : i32
    %c0_i32_1 = arith.constant 0 : i32
    return %c0_i32, %c0_i32_0 : i32, i32
  }
  func.func @transform_4(%arg0: i32) -> (i32, i32) {
    %c0_i32 = arith.constant 0 : i32
    %c0_i32_0 = arith.constant 0 : i32
    %c0_i32_1 = arith.constant 0 : i32
    return %c0_i32, %c0_i32_0 : i32, i32
  }
  func.func @transform_5(%arg0: i32) -> (i32, i32) {
    %c0_i32 = arith.constant 0 : i32
    %c0_i32_0 = arith.constant 0 : i32
    %c0_i32_1 = arith.constant 0 : i32
    return %c0_i32, %c0_i32_0 : i32, i32
  }
  func.func @transform_6(%arg0: i32) -> (i32, i32) {
    %c0_i32 = arith.constant 0 : i32
    %c0_i32_0 = arith.constant 0 : i32
    %c0_i32_1 = arith.constant 0 : i32
    return %c0_i32, %c0_i32_0 : i32, i32
  }
}

</mosaic_0001>

<bundles_post_ra>
// kernel: tpu_custom_call.1
= control target key start
LH: loop header
LB: loop body
LE: loop exit
PB: predicated region body
PF: predicated region fallthrough
CT: control target
= control target key end

     0   :  { %12 = vsyncpa [#allocation4], 0  ;;  %s1688_s0 = inlined_call_operand.hbm [shape: bf16[2,256,128], index: 0, kind: input, shape index: {}]   ;;  %s1689_s1 = inlined_call_operand.hbm [shape: bf16[128,128], index: 1, kind: input, shape index: {}]   ;;  %s1690_s2 = inlined_call_operand.vmem [shape: f32[1,128], index: 2, kind: input, shape index: {}]   ;;  %s1691_s3 = inlined_call_operand.hbm [shape: bf16[128,256], index: 3, kind: input, shape index: {}]   ;;  %s1692_s4 = inlined_call_operand.vmem [shape: f32[1,256], index: 4, kind: input, shape index: {}]   ;;  %s1693_s5 = inlined_call_operand.hbm [shape: f32[2,128], index: 5, kind: output, shape index: {0}]   ;;  %s1694_s6 = inlined_call_operand.hbm [shape: f32[2,128], index: 6, kind: output, shape index: {1}]  }
   0x1   :  { %13 = vsyncpa [#allocation7], 0 }
   0x2   :  { %14 = vsyncpa [#allocation5], 0 }
   0x3   :  { %15 = vsyncpa [#allocation11], 0  ;;  %s1415_s21 = smov [#allocation6]   ;;  %s1416_s23 = smov [#allocation3]  }
   0x4   :  { %s33_s22 = sshll.u32 %s1415_s21, 4  ;;  %s21_s24 = sshll.u32 %s1416_s23, 4  ;;  %s34_s22 = int_to_ptr.vmem [resolvable:$true] %s33_s22  ;;  %s1461_s24 = int_to_ptr.vmem [resolvable:$true] %s21_s24 }
   0x5   :  { %s1297_s27 = scalar_lea.hbm %s1689_s1, 1024 }
   0x6   :  { %p1298_p0 = scmp.ne.s32.totalorder %s1689_s1, %s1297_s27  ;;  %p1301_p1 = scmp.lt.u32.totalorder %s1297_s27, %s1689_s1 }
   0x8   :  { %p1303_p2 = pnand %p1301_p1, %p1298_p0 }
   0xa   :  { %1306 = shalt.err (!%p1303_p2)
}
   0xb   :  { %s1307_s8 = scalar_lea.vmem %s34_s22, 1024  ;;  %p1312_p4 = scmp.lt.s32.totalorder %s34_s22, %s34_s22 }
   0xc   :  { %p1308_p3 = scmp.ne.s32.totalorder %s34_s22, %s1307_s8  ;;  %p1313_p5 = scmp.lt.s32.totalorder %s1307_s8, %s1307_s8 }
   0xe   :  { %p1314_p6 = por %p1313_p5, %p1312_p4 }
  0x10   :  { %p1315_p7 = pnand %p1314_p6, %p1308_p3 }
  0x12   :  { %1318 = shalt.err (!%p1315_p7)
}
  0x13   :  { %s1417_s9 = smov 64   ;;  %s1418_s10 = smov 4  }
  0x14   :  { %39 = dma.hbm_to_vmem [thread:$0]  %s1689_s1, 1024, %s34_s22, [#allocation7], %s1417_s9, %s1417_s9, %s1418_s10  }
  0x15   :  { %s1319_s15 = scalar_lea.hbm %s1688_s0, 4096 }
  0x16   :  { %p1320_p8 = scmp.ne.s32.totalorder %s1688_s0, %s1319_s15  ;;  %p1323_p9 = scmp.lt.u32.totalorder %s1319_s15, %s1688_s0 }
  0x18   :  { %p1325_p10 = pnand %p1323_p9, %p1320_p8 }
  0x1a   :  { %1328 = shalt.err (!%p1325_p10)
}
  0x1b   :  { %s1329_s20 = scalar_lea.vmem %s1461_s24, 4096  ;;  %p1334_p12 = scmp.lt.s32.totalorder %s1461_s24, %s1461_s24 }
  0x1c   :  { %p1330_p11 = scmp.ne.s32.totalorder %s1461_s24, %s1329_s20  ;;  %p1335_p13 = scmp.lt.s32.totalorder %s1329_s20, %s1329_s20 }
  0x1e   :  { %p1336_p0 = por %p1335_p13, %p1334_p12 }
  0x20   :  { %p1337_p1 = pnand %p1336_p0, %p1330_p11 }
  0x22   :  { %1340 = shalt.err (!%p1337_p1)
}
  0x23   :  { %27 = dma.hbm_to_vmem [thread:$0]  %s1688_s0, 4096, %s1461_s24, [#allocation4], %s1417_s9, %s1417_s9, %s1418_s10  }
  0x24   :  { %s1419_s22 = smov [#allocation8]   ;;  %s1341_s27 = scalar_lea.hbm %s1691_s3, 2048 }
  0x25   :  { %s47_s23 = sshll.u32 %s1419_s22, 4  ;;  %p1342_p2 = scmp.ne.s32.totalorder %s1691_s3, %s1341_s27  ;;  %s48_s23 = int_to_ptr.vmem [resolvable:$true] %s47_s23 }
  0x26   :  { %p1345_p3 = scmp.lt.u32.totalorder %s1341_s27, %s1691_s3 }
  0x28   :  { %p1347_p4 = pnand %p1345_p3, %p1342_p2 }
  0x2a   :  { %1350 = shalt.err (!%p1347_p4)
}
  0x2b   :  { %s1351_s8 = scalar_lea.vmem %s48_s23, 2048  ;;  %p1356_p6 = scmp.lt.s32.totalorder %s48_s23, %s48_s23 }
  0x2c   :  { %p1352_p5 = scmp.ne.s32.totalorder %s48_s23, %s1351_s8  ;;  %p1357_p7 = scmp.lt.s32.totalorder %s1351_s8, %s1351_s8 }
  0x2e   :  { %p1358_p8 = por %p1357_p7, %p1356_p6 }
  0x30   :  { %p1359_p9 = pnand %p1358_p8, %p1352_p5 }
  0x32   :  { %1362 = shalt.err (!%p1359_p9)
}
  0x33   :  { %s1420_s0 = smov 128   ;;  %s1421_s24 = smov 8  }
  0x34   :  { %53 = dma.hbm_to_vmem [thread:$0]  %s1691_s3, 2048, %s48_s23, [#allocation7], %s1420_s0, %s1420_s0, %s1421_s24  }
  0x35   :  { %1407 = dma.done.wait [#allocation4], 4096  }
  0x36   :  { %1408 = vsyncadd [#allocation4], 4294963200 }
  0x37   :  { %1409 = dma.done.wait [#allocation7], 3072  }
  0x38   :  { %1410 = vsyncadd [#allocation7], 4294964224  ;;  %v1231_v0 = vld [vmem:[#allocation6] sm:$0xff]   ;;  %v1232_v1 = vld [vmem:[#allocation6 + $0x8] sm:$0xff]   ;;  %v1422_v47 = vmov 0.0   ;;  %vm828_vm0 = vcmask 1041409  }
  0x39   :  { %1124 = vmatprep.subr.bf16.mxu0 %v1231_v0  ;;  %1204 = vmatprep.subr.bf16.mxu1 %v1231_v0  ;;  %v1233_v2 = vld [vmem:[#allocation6 + $0x10] sm:$0xff]   ;;  %v1234_v3 = vld [vmem:[#allocation6 + $0x18] sm:$0xff]   ;;  %v1239_v4 = vld [vmem:[#allocation3] sm:$0xff]   ;;  %70 = vst [vmem:[#allocation2] sm:$0x3] %v1422_v47  ;;  %vm988_vm1 = vcmask 1041408  }
  0x3a   :  { %1125 = vmatpush3.bf16.msra.mxu0 %v1231_v0  ;;  %1212 = vmatpush3.bf16.msra.mxu1 %v1231_v0  ;;  %v1235_v5 = vld [vmem:[#allocation6 + $0x20] sm:$0xff]   ;;  %v1236_v6 = vld [vmem:[#allocation6 + $0x28] sm:$0xff]   ;;  %v1237_v7 = vld [vmem:[#allocation6 + $0x30] sm:$0xff]   ;;  %s1424_s13 = smov [#allocation10]  }
  0x3b   :  { %1126 = vmatprep.subr.bf16.mxu0 %v1232_v1  ;;  %1205 = vmatprep.subr.bf16.mxu1 %v1232_v1  ;;  %v1238_v8 = vld [vmem:[#allocation6 + $0x38] sm:$0xff]   ;;  %v1257_v9 = vld [vmem:[#allocation3 + $0x90] sm:$0xff]   ;;  %v1240_v10 = vld [vmem:[#allocation3 + $0x8] sm:$0xff]   ;;  %s1013_s14 = sshll.u32 %s1424_s13, 4  ;;  %s1014_s14 = int_to_ptr.vmem [resolvable:$true] %s1013_s14 }
  0x3c   :  { %1140 = vmatprep.mubr.bf16.mxu0 %v1239_v4  ;;  %v1241_v11 = vld [vmem:[#allocation3 + $0x10] sm:$0xff]   ;;  %1176 = vmatprep.mubr.bf16.mxu1 %v1257_v9  ;;  %v1258_v12 = vld [vmem:[#allocation3 + $0x98] sm:$0xff]   ;;  %v1259_v13 = vld [vmem:[#allocation3 + $0xa0] sm:$0xff]   ;;  %s1363_s15 = scalar_lea.vmem %s1014_s14, 32  ;;  %p1368_p11 = scmp.lt.s32.totalorder %s1014_s14, %s1014_s14 }
  0x3d   :  { %v1242_v14 = vld [vmem:[#allocation3 + $0x18] sm:$0xff]   ;;  %v1243_v15 = vld [vmem:[#allocation3 + $0x20] sm:$0xff]   ;;  %v1260_v16 = vld [vmem:[#allocation3 + $0xa8] sm:$0xff]   ;;  %p1364_p10 = scmp.ne.s32.totalorder %s1014_s14, %s1363_s15  ;;  %p1369_p12 = scmp.lt.s32.totalorder %s1363_s15, %s1363_s15 }
  0x3e   :  { %1127 = vmatpush3.bf16.msra.mxu0 %v1232_v1  ;;  %1213 = vmatpush3.bf16.msra.mxu1 %v1232_v1  ;;  %v1261_v17 = vld [vmem:[#allocation3 + $0xb0] sm:$0xff]   ;;  %v1244_v18 = vld [vmem:[#allocation3 + $0x28] sm:$0xff]   ;;  %v1262_v19 = vld [vmem:[#allocation3 + $0xb8] sm:$0xff]  }
  0x3f   :  { %1128 = vmatprep.subr.bf16.mxu0 %v1233_v2  ;;  %1206 = vmatprep.subr.bf16.mxu1 %v1233_v2  ;;  %v1245_v20 = vld [vmem:[#allocation3 + $0x30] sm:$0xff]   ;;  %v1263_v21 = vld [vmem:[#allocation3 + $0xc0] sm:$0xff]   ;;  %v1246_v22 = vld [vmem:[#allocation3 + $0x38] sm:$0xff]   ;;  %p1370_p13 = por %p1369_p12, %p1368_p11 }
  0x40   :  { %v1264_v23 = vld [vmem:[#allocation3 + $0xc8] sm:$0xff]   ;;  %v1247_v24 = vld [vmem:[#allocation3 + $0x40] sm:$0xff]   ;;  %v1265_v25 = vld [vmem:[#allocation3 + $0xd0] sm:$0xff]  }
  0x41   :  { %v1248_v26 = vld [vmem:[#allocation3 + $0x48] sm:$0xff]   ;;  %v1266_v27 = vld [vmem:[#allocation3 + $0xd8] sm:$0xff]   ;;  %v1249_v28 = vld [vmem:[#allocation3 + $0x50] sm:$0xff]   ;;  %p1371_p0 = pnand %p1370_p13, %p1364_p10 }
  0x42   :  { %1129 = vmatpush3.bf16.msra.mxu0 %v1233_v2  ;;  %1214 = vmatpush3.bf16.msra.mxu1 %v1233_v2  ;;  %v1267_v29 = vld [vmem:[#allocation3 + $0xe0] sm:$0xff]   ;;  %v1250_v30 = vld [vmem:[#allocation3 + $0x58] sm:$0xff]   ;;  %v1268_v31 = vld [vmem:[#allocation3 + $0xe8] sm:$0xff]  }
  0x43   :  { %1130 = vmatprep.subr.bf16.mxu0 %v1234_v3  ;;  %1207 = vmatprep.subr.bf16.mxu1 %v1234_v3  ;;  %v1251_v32 = vld [vmem:[#allocation3 + $0x60] sm:$0xff]   ;;  %v1269_v33 = vld [vmem:[#allocation3 + $0xf0] sm:$0xff]   ;;  %v1252_v34 = vld [vmem:[#allocation3 + $0x68] sm:$0xff]  }
  0x44   :  { %v1270_v35 = vld [vmem:[#allocation3 + $0xf8] sm:$0xff]   ;;  %v1253_v36 = vld [vmem:[#allocation3 + $0x70] sm:$0xff]   ;;  %v1255_v38 = vld [vmem:[#allocation3 + $0x80] sm:$0xff]  }
  0x45   :  { %v1254_v37 = vld [vmem:[#allocation3 + $0x78] sm:$0xff]   ;;  %v1256_v39 = vld [vmem:[#allocation3 + $0x88] sm:$0xff]  }
  0x46   :  { %1131 = vmatpush3.bf16.msra.mxu0 %v1234_v3  ;;  %1215 = vmatpush3.bf16.msra.mxu1 %v1234_v3  ;;  %v1271_v40 = vld [vmem:[#allocation8] ss:$8 sps:$4 sm:$0xff]   ;;  %v1273_v41 = vld [vmem:[#allocation8 + $0x4] ss:$8 sps:$4 sm:$0xff]   ;;  %v1274_v42 = vld [vmem:[#allocation8 + $0x10] ss:$8 sps:$4 sm:$0xff]  }
  0x47   :  { %1132 = vmatprep.subr.bf16.mxu0 %v1235_v5  ;;  %1208 = vmatprep.subr.bf16.mxu1 %v1235_v5  ;;  %v1276_v43 = vld [vmem:[#allocation8 + $0x14] ss:$8 sps:$4 sm:$0xff]   ;;  %v1277_v44 = vld [vmem:[#allocation8 + $0x20] ss:$8 sps:$4 sm:$0xff]   ;;  %v1279_v45 = vld [vmem:[#allocation8 + $0x24] ss:$8 sps:$4 sm:$0xff]  }
  0x48   :  { %v1507_v46 = vld [vmem:[%s1690_s2] ss:$0 sm:$0xff] }
  0x49   :  { %v1282_v4 = vld [vmem:[#allocation8 + $0x34] ss:$8 sps:$4 sm:$0xff]  }
  0x4a   :  { %1133 = vmatpush3.bf16.msra.mxu0 %v1235_v5  ;;  %1216 = vmatpush3.bf16.msra.mxu1 %v1235_v5  ;;  %v1294_v47 = vld [vmem:[#allocation8 + $0x74] ss:$8 sps:$4 sm:$0xff]  }
  0x4b   :  { %1134 = vmatprep.subr.bf16.mxu0 %v1236_v6  ;;  %1209 = vmatprep.subr.bf16.mxu1 %v1236_v6 }
  0x4e   :  { %1135 = vmatpush3.bf16.msra.mxu0 %v1236_v6  ;;  %1217 = vmatpush3.bf16.msra.mxu1 %v1236_v6 }
  0x4f   :  { %1136 = vmatprep.subr.bf16.mxu0 %v1237_v7  ;;  %1210 = vmatprep.subr.bf16.mxu1 %v1237_v7 }
  0x52   :  { %1137 = vmatpush3.bf16.msra.mxu0 %v1237_v7  ;;  %1218 = vmatpush3.bf16.msra.mxu1 %v1237_v7 }
  0x53   :  { %1138 = vmatprep.subr.bf16.mxu0 %v1238_v8  ;;  %1211 = vmatprep.subr.bf16.mxu1 %v1238_v8 }
  0x56   :  { %1139 = vmatpush3.bf16.msra.mxu0 %v1238_v8  ;;  %1219 = vmatpush3.bf16.msra.mxu1 %v1238_v8 }
  0x57   :  { %946 = vmatprep.subr.bf16.mxu1 %v1273_v41  ;;  %v1289_v41 = vld [vmem:[#allocation8 + $0x60] ss:$8 sps:$4 sm:$0xff]  }
  0x59   :  { %1141 = vmatmul.mubr.bf16.vlgmr.msra.gmra.mrb[0].mxu0 %v1240_v10  ;;  %1177 = vmatmul.mubr.bf16.vlgmr.msra.gmra.mrb[0].mxu1 %v1258_v12  ;;  %v1280_v10 = vld [vmem:[#allocation8 + $0x30] ss:$8 sps:$4 sm:$0xff]  }
  0x5a   :  { %1144 = vmatprep.mubr.bf16.mxu0 %v1241_v11  ;;  %1180 = vmatprep.mubr.bf16.mxu1 %v1259_v13 }
  0x5b   :  { %947 = vmatpush1.bf16.msra.mxu1 %v1271_v40 }
  0x5c   :  { %948 = vmatprep.subr.bf16.mxu1 %v1276_v43 }
  0x5f   :  { %949 = vmatpush1.bf16.msra.mxu1 %v1274_v42  ;;  %v1291_v42 = vld [vmem:[#allocation8 + $0x64] ss:$8 sps:$4 sm:$0xff]  }
  0x60   :  { %950 = vmatprep.subr.bf16.mxu1 %v1279_v45 }
  0x61   :  { %1145 = vmatmul.mubr.bf16.gmra.mrb[4].mxu0 %v1242_v14  ;;  %1181 = vmatmul.mubr.bf16.gmra.mrb[4].mxu1 %v1260_v16 }
  0x62   :  { %1148 = vmatprep.mubr.bf16.mxu0 %v1243_v15  ;;  %1184 = vmatprep.mubr.bf16.mxu1 %v1261_v17  ;;  %v1285_v17 = vld [vmem:[#allocation8 + $0x44] ss:$8 sps:$4 sm:$0xff]  }
  0x63   :  { %951 = vmatpush1.bf16.msra.mxu1 %v1277_v44 }
  0x64   :  { %952 = vmatprep.subr.bf16.mxu1 %v1282_v4 }
  0x67   :  { %953 = vmatpush1.bf16.msra.mxu1 %v1280_v10 }
  0x68   :  { %954 = vmatprep.subr.bf16.mxu1 %v1285_v17 }
  0x69   :  { %1149 = vmatmul.mubr.bf16.gmra.mrb[8].mxu0 %v1244_v18  ;;  %1185 = vmatmul.mubr.bf16.gmra.mrb[8].mxu1 %v1262_v19 }
  0x6a   :  { %1152 = vmatprep.mubr.bf16.mxu0 %v1245_v20  ;;  %1188 = vmatprep.mubr.bf16.mxu1 %v1263_v21  ;;  %v1283_v21 = vld [vmem:[#allocation8 + $0x40] ss:$8 sps:$4 sm:$0xff]  }
  0x6b   :  { %955 = vmatpush1.bf16.msra.mxu1 %v1283_v21 }
  0x71   :  { %1153 = vmatmul.mubr.bf16.gmra.mrb[12].mxu0 %v1246_v22  ;;  %1189 = vmatmul.mubr.bf16.gmra.mrb[12].mxu1 %v1264_v23 }
  0x72   :  { %1156 = vmatprep.mubr.bf16.mxu0 %v1247_v24  ;;  %1192 = vmatprep.mubr.bf16.mxu1 %v1265_v25 }
  0x79   :  { %1157 = vmatmul.mubr.bf16.gmra.mrb[16].mxu0 %v1248_v26  ;;  %1193 = vmatmul.mubr.bf16.gmra.mrb[16].mxu1 %v1266_v27 }
  0x7a   :  { %1160 = vmatprep.mubr.bf16.mxu0 %v1249_v28  ;;  %1196 = vmatprep.mubr.bf16.mxu1 %v1267_v29  ;;  %v1288_v28 = vld [vmem:[#allocation8 + $0x54] ss:$8 sps:$4 sm:$0xff]  }
  0x7b   :  { %956 = vmatprep.subr.bf16.mxu1 %v1288_v28 }
  0x81   :  { %1161 = vmatmul.mubr.bf16.gmra.mrb[20].mxu0 %v1250_v30  ;;  %1197 = vmatmul.mubr.bf16.gmra.mrb[20].mxu1 %v1268_v31 }
  0x82   :  { %1164 = vmatprep.mubr.bf16.mxu0 %v1251_v32  ;;  %1200 = vmatprep.mubr.bf16.mxu1 %v1269_v33 }
  0x89   :  { %1165 = vmatmul.mubr.bf16.gmra.mrb[24].mxu0 %v1252_v34  ;;  %1201 = vmatmul.mubr.bf16.gmra.mrb[24].mxu1 %v1270_v35  ;;  %v1286_v34 = vld [vmem:[#allocation8 + $0x50] ss:$8 sps:$4 sm:$0xff]  }
  0x8a   :  { %1168 = vmatprep.mubr.bf16.mxu0 %v1253_v36  ;;  %957 = vmatpush1.bf16.msra.mxu1 %v1286_v34 }
  0x8b   :  { %958 = vmatprep.subr.bf16.mxu1 %v1291_v42 }
  0x8e   :  { %959 = vmatpush1.bf16.msra.mxu1 %v1289_v41 }
  0x8f   :  { %960 = vmatprep.subr.bf16.mxu1 %v1294_v47 }
  0x91   :  { %1169 = vmatmul.mubr.bf16.gmra.mrb[28].mxu0 %v1254_v37 }
  0x92   :  { %1172 = vmatprep.mubr.bf16.mxu0 %v1255_v38 }
  0x99   :  { %1173 = vmatmul.mubr.bf16.gmra.mrb[32].mxu0 %v1256_v39 }
 0x12c   :  { %v1142_v48 = vpop.f32.mrb[0].mxu0  ;;  %v1509_v49 = vpop.f32.mrb[0].mxu1 }
 0x12d   :  { %v432_v50 = vpop.f32.mrb[1].mxu0  ;;  %v1511_v51 = vpop.f32.mrb[1].mxu1  ;;  %v441_v57 = vadd.f32 %v1142_v48, %v1507_v46  ;;  %v1423_v48 = vmov 0  }
 0x12e   :  { %v433_v52 = vadd.f32 %v1507_v46, %v432_v50  ;;  %v1143_v53 = vpop.f32.mrb[2].mxu0  ;;  %v1514_v54 = vpop.f32.mrb[2].mxu1  ;;  %978 = vmatprep.mubr.bf16.mxu1 %v1423_v48 }
 0x12f   :  { %v435_v55 = vpop.f32.mrb[3].mxu0  ;;  %v1516_v56 = vpop.f32.mrb[3].mxu1  ;;  %v444_v60 = vadd.f32 %v1143_v53, %v1507_v46  ;;  %v689_v62 = vmax.f32 %v441_v57, 0.0  ;;  %v1292_v57 = vld [vmem:[#allocation8 + $0x70] ss:$8 sps:$4 sm:$0xff]  }
 0x130   :  { %v436_v58 = vadd.f32 %v1507_v46, %v435_v55  ;;  %v687_v59 = vmax.f32 %v433_v52, 0.0  ;;  %961 = vmatpush1.bf16.msra.mxu1 %v1292_v57 }
 0x131   :  { %v690_v5 = vmax.f32 %v444_v60, 0.0 }
 0x132   :  { %v688_v61 = vmax.f32 %v436_v58, 0.0 }
 0x134   :  { %v752_v63 = vadd.f32 %v688_v61, %v687_v59  ;;  %v1146_v0 = vpop.f32.mrb[4].mxu0  ;;  %v1521_v1 = vpop.f32.mrb[4].mxu1 }
 0x135   :  { %v448_v2 = vpop.f32.mrb[5].mxu0  ;;  %v1523_v3 = vpop.f32.mrb[5].mxu1  ;;  %v457_v13 = vadd.f32 %v1146_v0, %v1507_v46 }
 0x136   :  { %v753_v6 = vadd.f32 %v752_v63, %v689_v62  ;;  %v449_v7 = vadd.f32 %v1507_v46, %v448_v2  ;;  %v1147_v8 = vpop.f32.mrb[6].mxu0  ;;  %v1526_v9 = vpop.f32.mrb[6].mxu1 }
 0x137   :  { %v451_v11 = vpop.f32.mrb[7].mxu0  ;;  %v1528_v12 = vpop.f32.mrb[7].mxu1  ;;  %v460_v19 = vadd.f32 %v1147_v8, %v1507_v46  ;;  %v693_v22 = vmax.f32 %v457_v13, 0.0 }
 0x138   :  { %v691_v14 = vmax.f32 %v449_v7, 0.0  ;;  %v754_v15 = vadd.f32 %v753_v6, %v690_v5  ;;  %v452_v16 = vadd.f32 %v1507_v46, %v451_v11 }
 0x139   :  { %v694_v29 = vmax.f32 %v460_v19, 0.0 }
 0x13a   :  { %v755_v18 = vadd.f32 %v754_v15, %v691_v14  ;;  %v692_v20 = vmax.f32 %v452_v16, 0.0 }
 0x13c   :  { %v756_v23 = vadd.f32 %v755_v18, %v692_v20  ;;  %v1150_v24 = vpop.f32.mrb[8].mxu0  ;;  %v1533_v25 = vpop.f32.mrb[8].mxu1 }
 0x13d   :  { %v464_v26 = vpop.f32.mrb[9].mxu0  ;;  %v1535_v27 = vpop.f32.mrb[9].mxu1  ;;  %v473_v37 = vadd.f32 %v1150_v24, %v1507_v46 }
 0x13e   :  { %v757_v30 = vadd.f32 %v756_v23, %v693_v22  ;;  %v465_v31 = vadd.f32 %v1507_v46, %v464_v26  ;;  %v1151_v32 = vpop.f32.mrb[10].mxu0  ;;  %v1538_v33 = vpop.f32.mrb[10].mxu1 }
 0x13f   :  { %v467_v35 = vpop.f32.mrb[11].mxu0  ;;  %v1540_v36 = vpop.f32.mrb[11].mxu1  ;;  %v476_v44 = vadd.f32 %v1151_v32, %v1507_v46  ;;  %v697_v50 = vmax.f32 %v473_v37, 0.0 }
 0x140   :  { %v695_v38 = vmax.f32 %v465_v31, 0.0  ;;  %v758_v39 = vadd.f32 %v757_v30, %v694_v29  ;;  %v468_v40 = vadd.f32 %v1507_v46, %v467_v35 }
 0x141   :  { %v698_v60 = vmax.f32 %v476_v44, 0.0 }
 0x142   :  { %v759_v43 = vadd.f32 %v758_v39, %v695_v38  ;;  %v696_v45 = vmax.f32 %v468_v40, 0.0 }
 0x144   :  { %v760_v52 = vadd.f32 %v759_v43, %v696_v45  ;;  %v1154_v53 = vpop.f32.mrb[12].mxu0  ;;  %v1545_v55 = vpop.f32.mrb[12].mxu1 }
 0x145   :  { %v480_v58 = vpop.f32.mrb[13].mxu0  ;;  %v1547_v59 = vpop.f32.mrb[13].mxu1  ;;  %v489_v5 = vadd.f32 %v1154_v53, %v1507_v46 }
 0x146   :  { %v761_v61 = vadd.f32 %v760_v52, %v697_v50  ;;  %v481_v62 = vadd.f32 %v1507_v46, %v480_v58  ;;  %v1155_v63 = vpop.f32.mrb[14].mxu0  ;;  %v1550_v0 = vpop.f32.mrb[14].mxu1 }
 0x147   :  { %v483_v2 = vpop.f32.mrb[15].mxu0  ;;  %v1552_v4 = vpop.f32.mrb[15].mxu1  ;;  %v492_v11 = vadd.f32 %v1155_v63, %v1507_v46  ;;  %v701_v14 = vmax.f32 %v489_v5, 0.0 }
 0x148   :  { %v699_v6 = vmax.f32 %v481_v62, 0.0  ;;  %v762_v7 = vadd.f32 %v761_v61, %v698_v60  ;;  %v484_v8 = vadd.f32 %v1507_v46, %v483_v2 }
 0x149   :  { %v702_v20 = vmax.f32 %v492_v11, 0.0 }
 0x14a   :  { %v763_v10 = vadd.f32 %v762_v7, %v699_v6  ;;  %v700_v13 = vmax.f32 %v484_v8, 0.0 }
 0x14c   :  { %v764_v15 = vadd.f32 %v763_v10, %v700_v13  ;;  %v1158_v16 = vpop.f32.mrb[16].mxu0  ;;  %v1557_v17 = vpop.f32.mrb[16].mxu1 }
 0x14d   :  { %v496_v18 = vpop.f32.mrb[17].mxu0  ;;  %v1559_v19 = vpop.f32.mrb[17].mxu1  ;;  %v505_v29 = vadd.f32 %v1158_v16, %v1507_v46 }
 0x14e   :  { %v765_v21 = vadd.f32 %v764_v15, %v701_v14  ;;  %v497_v22 = vadd.f32 %v1507_v46, %v496_v18  ;;  %v1159_v23 = vpop.f32.mrb[18].mxu0  ;;  %v1562_v24 = vpop.f32.mrb[18].mxu1 }
 0x14f   :  { %v499_v26 = vpop.f32.mrb[19].mxu0  ;;  %v1564_v28 = vpop.f32.mrb[19].mxu1  ;;  %v508_v35 = vadd.f32 %v1159_v23, %v1507_v46  ;;  %v705_v38 = vmax.f32 %v505_v29, 0.0 }
 0x150   :  { %v703_v30 = vmax.f32 %v497_v22, 0.0  ;;  %v766_v31 = vadd.f32 %v765_v21, %v702_v20  ;;  %v500_v32 = vadd.f32 %v1507_v46, %v499_v26 }
 0x151   :  { %v706_v44 = vmax.f32 %v508_v35, 0.0 }
 0x152   :  { %v767_v34 = vadd.f32 %v766_v31, %v703_v30  ;;  %v704_v37 = vmax.f32 %v500_v32, 0.0 }
 0x154   :  { %v768_v39 = vadd.f32 %v767_v34, %v704_v37  ;;  %v1162_v40 = vpop.f32.mrb[20].mxu0  ;;  %v1569_v41 = vpop.f32.mrb[20].mxu1 }
 0x155   :  { %v512_v42 = vpop.f32.mrb[21].mxu0  ;;  %v1571_v43 = vpop.f32.mrb[21].mxu1  ;;  %v521_v57 = vadd.f32 %v1162_v40, %v1507_v46 }
 0x156   :  { %v769_v45 = vadd.f32 %v768_v39, %v705_v38  ;;  %v513_v47 = vadd.f32 %v1507_v46, %v512_v42  ;;  %v1163_v48 = vpop.f32.mrb[22].mxu0  ;;  %v1574_v50 = vpop.f32.mrb[22].mxu1 }
 0x157   :  { %v515_v52 = vpop.f32.mrb[23].mxu0  ;;  %v1576_v53 = vpop.f32.mrb[23].mxu1  ;;  %v524_v63 = vadd.f32 %v1163_v48, %v1507_v46  ;;  %v709_v5 = vmax.f32 %v521_v57, 0.0 }
 0x158   :  { %v707_v58 = vmax.f32 %v513_v47, 0.0  ;;  %v770_v60 = vadd.f32 %v769_v45, %v706_v44  ;;  %v516_v61 = vadd.f32 %v1507_v46, %v515_v52 }
 0x159   :  { %v710_v13 = vmax.f32 %v524_v63, 0.0 }
 0x15a   :  { %v771_v62 = vadd.f32 %v770_v60, %v707_v58  ;;  %v708_v2 = vmax.f32 %v516_v61, 0.0 }
 0x15c   :  { %v772_v6 = vadd.f32 %v771_v62, %v708_v2  ;;  %v1166_v7 = vpop.f32.mrb[24].mxu0  ;;  %v1581_v8 = vpop.f32.mrb[24].mxu1 }
 0x15d   :  { %v528_v10 = vpop.f32.mrb[25].mxu0  ;;  %v1583_v11 = vpop.f32.mrb[25].mxu1  ;;  %v537_v22 = vadd.f32 %v1166_v7, %v1507_v46 }
 0x15e   :  { %v773_v14 = vadd.f32 %v772_v6, %v709_v5  ;;  %v529_v15 = vadd.f32 %v1507_v46, %v528_v10  ;;  %v1167_v16 = vpop.f32.mrb[26].mxu0  ;;  %v1586_v18 = vpop.f32.mrb[26].mxu1 }
 0x15f   :  { %v531_v20 = vpop.f32.mrb[27].mxu0  ;;  %v1588_v21 = vpop.f32.mrb[27].mxu1  ;;  %v540_v31 = vadd.f32 %v1167_v16, %v1507_v46  ;;  %v713_v34 = vmax.f32 %v537_v22, 0.0 }
 0x160   :  { %v711_v23 = vmax.f32 %v529_v15, 0.0  ;;  %v774_v26 = vadd.f32 %v773_v14, %v710_v13  ;;  %v532_v29 = vadd.f32 %v1507_v46, %v531_v20 }
 0x161   :  { %v714_v39 = vmax.f32 %v540_v31, 0.0 }
 0x162   :  { %v775_v30 = vadd.f32 %v774_v26, %v711_v23  ;;  %v712_v32 = vmax.f32 %v532_v29, 0.0  ;;  %v577_v29 = vadd.f32 %v1507_v46, %v1511_v51  ;;  %v593_v51 = vadd.f32 %v1507_v46, %v1523_v3 }
 0x163   :  { %v609_v3 = vadd.f32 %v1507_v46, %v1535_v27  ;;  %v625_v27 = vadd.f32 %v1507_v46, %v1547_v59  ;;  %v641_v59 = vadd.f32 %v1507_v46, %v1559_v19  ;;  %v657_v19 = vadd.f32 %v1507_v46, %v1571_v43 }
 0x164   :  { %v776_v35 = vadd.f32 %v775_v30, %v712_v32  ;;  %v1170_v37 = vpop.f32.mrb[28].mxu0  ;;  %v673_v43 = vadd.f32 %v1507_v46, %v1583_v11 }
 0x165   :  { %v544_v38 = vpop.f32.mrb[29].mxu0  ;;  %v553_v47 = vadd.f32 %v1170_v37, %v1507_v46  ;;  %v580_v37 = vadd.f32 %v1507_v46, %v1516_v56  ;;  %v596_v56 = vadd.f32 %v1507_v46, %v1528_v12  ;;  %v612_v12 = vadd.f32 %v1507_v46, %v1540_v36 }
 0x166   :  { %v777_v40 = vadd.f32 %v776_v35, %v713_v34  ;;  %v545_v42 = vadd.f32 %v1507_v46, %v544_v38  ;;  %v1171_v44 = vpop.f32.mrb[30].mxu0  ;;  %v723_v35 = vmax.f32 %v577_v29, 0.0  ;;  %v585_v38 = vadd.f32 %v1509_v49, %v1507_v46 }
 0x167   :  { %v547_v45 = vpop.f32.mrb[31].mxu0  ;;  %v556_v60 = vadd.f32 %v1171_v44, %v1507_v46  ;;  %v717_v62 = vmax.f32 %v553_v47, 0.0  ;;  %v724_v44 = vmax.f32 %v580_v37, 0.0  ;;  %v601_v49 = vadd.f32 %v1521_v1, %v1507_v46 }
 0x168   :  { %v715_v48 = vmax.f32 %v545_v42, 0.0  ;;  %v778_v52 = vadd.f32 %v777_v40, %v714_v39  ;;  %v548_v57 = vadd.f32 %v1507_v46, %v547_v45  ;;  %v588_v42 = vadd.f32 %v1514_v54, %v1507_v46 }
 0x169   :  { %v718_v6 = vmax.f32 %v556_v60, 0.0  ;;  %v725_v45 = vmax.f32 %v585_v38, 0.0  ;;  %v604_v54 = vadd.f32 %v1526_v9, %v1507_v46  ;;  %v617_v1 = vadd.f32 %v1533_v25, %v1507_v46 }
 0x16a   :  { %v779_v58 = vadd.f32 %v778_v52, %v715_v48  ;;  %v716_v61 = vmax.f32 %v548_v57, 0.0  ;;  %v726_v48 = vmax.f32 %v588_v42, 0.0  ;;  %v727_v57 = vmax.f32 %v593_v51, 0.0 }
 0x16b   :  { %v620_v9 = vadd.f32 %v1538_v33, %v1507_v46  ;;  %v628_v36 = vadd.f32 %v1507_v46, %v1552_v4  ;;  %v633_v25 = vadd.f32 %v1545_v55, %v1507_v46  ;;  %v636_v33 = vadd.f32 %v1550_v0, %v1507_v46 }
 0x16c   :  { %v780_v63 = vadd.f32 %v779_v58, %v716_v61  ;;  %v1174_v2 = vpop.f32.mrb[32].mxu0  ;;  %v728_v61 = vmax.f32 %v596_v56, 0.0  ;;  %v739_v37 = vmax.f32 %v641_v59, 0.0  ;;  %v644_v4 = vadd.f32 %v1507_v46, %v1564_v28 }
 0x16d   :  { %v560_v5 = vpop.f32.mrb[33].mxu0  ;;  %v569_v16 = vadd.f32 %v1174_v2, %v1507_v46  ;;  %v730_v2 = vmax.f32 %v604_v54, 0.0  ;;  %v649_v55 = vadd.f32 %v1557_v17, %v1507_v46  ;;  %v652_v0 = vadd.f32 %v1562_v24, %v1507_v46 }
 0x16e   :  { %v781_v7 = vadd.f32 %v780_v63, %v717_v62  ;;  %v561_v10 = vadd.f32 %v1507_v46, %v560_v5  ;;  %v1175_v13 = vpop.f32.mrb[34].mxu0  ;;  %v729_v62 = vmax.f32 %v601_v49, 0.0  ;;  %v660_v28 = vadd.f32 %v1507_v46, %v1576_v53 }
 0x16f   :  { %v563_v14 = vpop.f32.mrb[35].mxu0  ;;  %v572_v23 = vadd.f32 %v1175_v13, %v1507_v46  ;;  %v721_v30 = vmax.f32 %v569_v16, 0.0  ;;  %v732_v13 = vmax.f32 %v612_v12, 0.0  ;;  %v741_v42 = vmax.f32 %v649_v55, 0.0 }
 0x170   :  { %v1598_v15 = vadd.f32 %v781_v7, %v718_v6  ;;  %v564_v20 = vadd.f32 %v1507_v46, %v563_v14  ;;  %v719_v22 = vmax.f32 %v561_v10, 0.0  ;;  %v731_v6 = vmax.f32 %v609_v3, 0.0 }
 0x171   :  { %v722_v32 = vmax.f32 %v572_v23, 0.0  ;;  %v733_v14 = vmax.f32 %v617_v1, 0.0  ;;  %v735_v23 = vmax.f32 %v625_v27, 0.0  ;;  %v742_v51 = vmax.f32 %v652_v0, 0.0 }
 0x172   :  { %v720_v26 = vmax.f32 %v564_v20, 0.0  ;;  %v734_v20 = vmax.f32 %v620_v9, 0.0  ;;  %v665_v17 = vadd.f32 %v1569_v41, %v1507_v46  ;;  %v668_v24 = vadd.f32 %v1574_v50, %v1507_v46 }
 0x173   :  { %v747_v54 = vmax.f32 %v673_v43, 0.0  ;;  %v676_v53 = vadd.f32 %v1507_v46, %v1588_v21  ;;  %v681_v41 = vadd.f32 %v1581_v8, %v1507_v46  ;;  %v684_v50 = vadd.f32 %v1586_v18, %v1507_v46 }
 0x174   :  { %v789_v31 = vadd.f32 %v720_v26, %v719_v22  ;;  %v745_v56 = vmax.f32 %v665_v17, 0.0 }
 0x176   :  { %v790_v34 = vadd.f32 %v789_v31, %v721_v30  ;;  %v736_v30 = vmax.f32 %v628_v36, 0.0  ;;  %v737_v31 = vmax.f32 %v633_v25, 0.0  ;;  %v856_v36 = vlaneseq }
 0x178   :  { %v791_v39 = vadd.f32 %v790_v34, %v722_v32  ;;  %v738_v34 = vmax.f32 %v636_v33, 0.0  ;;  %v857_v25 = vshrl.u32 %v856_v36, 7 }
 0x17a   :  { %v792_v40 = vadd.f32 %v791_v39, %v723_v35  ;;  %v862_v33 = vsub.s32 1, %v857_v25 }
 0x17c   :  { %v793_v47 = vadd.f32 %v792_v40, %v724_v44  ;;  %v740_v40 = vmax.f32 %v644_v4, 0.0 }
 0x17e   :  { %v794_v52 = vadd.f32 %v793_v47, %v725_v45  ;;  %v743_v47 = vmax.f32 %v657_v19, 0.0 }
 0x180   :  { %v795_v58 = vadd.f32 %v794_v52, %v726_v48 }
 0x182   :  { %v796_v60 = vadd.f32 %v795_v58, %v727_v57  ;;  %v744_v57 = vmax.f32 %v660_v28, 0.0  ;;  %v746_v58 = vmax.f32 %v668_v24, 0.0 }
 0x184   :  { %v797_v63 = vadd.f32 %v796_v60, %v728_v61  ;;  %v783_v61 = vrot.slane %v1598_v15, 4 }
 0x186   :  { %v798_v5 = vadd.f32 %v797_v63, %v729_v62  ;;  %v748_v63 = vmax.f32 %v676_v53, 0.0  ;;  %v784_v11 = vadd.f32 %v783_v61, %v1598_v15 }
 0x188   :  { %v799_v7 = vadd.f32 %v798_v5, %v730_v2  ;;  %v749_v2 = vmax.f32 %v681_v41, 0.0  ;;  %v785_v1 = vrot.slane %v784_v11, 2 }
 0x18a   :  { %v800_v10 = vadd.f32 %v799_v7, %v731_v6  ;;  %v750_v6 = vmax.f32 %v684_v50, 0.0 }
 0x18c   :  { %v801_v16 = vadd.f32 %v800_v10, %v732_v13  ;;  %v786_v10 = vadd.f32 %v785_v1, %v784_v11 }
 0x18e   :  { %v802_v22 = vadd.f32 %v801_v16, %v733_v14  ;;  %v787_v27 = vrot.slane %v786_v10, 1 }
 0x190   :  { %v803_v26 = vadd.f32 %v802_v22, %v734_v20  ;;  %v788_v16 = vadd.f32 %v787_v27, %v786_v10  ;;  %v751_v20 = vld [vmem:[#allocation2] sm:$0x3] }
 0x192   :  { %v804_v29 = vadd.f32 %v803_v26, %v735_v23  ;;  %v858_v26 = vsub.s32 0, %v857_v25 }
 0x194   :  { %v805_v32 = vadd.f32 %v804_v29, %v736_v30  ;;  %v854_v29 = vld [vmem:[%s1692_s4] sm:$0x3] }
 0x195   :  { %v859_v30 = vrot.slane %v854_v29, %v858_v26  ;;  %v863_v59 = vrot.slane %v854_v29, %v862_v33 }
 0x196   :  { %v806_v35 = vadd.f32 %v805_v32, %v737_v31 }
 0x198   :  { %v807_v38 = vadd.f32 %v806_v35, %v738_v34 }
 0x19a   :  { %v808_v39 = vadd.f32 %v807_v38, %v739_v37 }
 0x19c   :  { %v809_v44 = vadd.f32 %v808_v39, %v740_v40 }
 0x19e   :  { %v810_v45 = vadd.f32 %v809_v44, %v741_v42 }
 0x1a0   :  { %v811_v48 = vadd.f32 %v810_v45, %v742_v51 }
 0x1a2   :  { %v812_v52 = vadd.f32 %v811_v48, %v743_v47 }
 0x1a4   :  { %v813_v49 = vadd.f32 %v812_v52, %v744_v57 }
 0x1a6   :  { %v814_v60 = vadd.f32 %v813_v49, %v745_v56 }
 0x1a8   :  { %v815_v3 = vadd.f32 %v814_v60, %v746_v58 }
 0x1aa   :  { %v816_v62 = vadd.f32 %v815_v3, %v747_v54 }
 0x1ac   :  { %v817_v5 = vadd.f32 %v816_v62, %v748_v63 }
 0x1ae   :  { %v818_v12 = vadd.f32 %v817_v5, %v749_v2 }
 0x1b0   :  { %v819_v7 = vadd.f32 %v818_v12, %v750_v6 }
 0x1b2   :  { %v820_v21 = vrot.slane %v819_v7, 4 }
 0x1b4   :  { %v821_v9 = vadd.f32 %v820_v21, %v819_v7 }
 0x1b6   :  { %v822_v13 = vrot.slane %v821_v9, 2 }
 0x1b8   :  { %v823_v8 = vadd.f32 %v822_v13, %v821_v9 }
 0x1ba   :  { %v824_v14 = vrot.slane %v823_v8, 1 }
 0x1bc   :  { %v825_v46 = vadd.f32 %v824_v14, %v823_v8 }
 0x1be   :  { %v829_v18 = vsel %vm828_vm0, %v825_v46, %v788_v16 }
 0x1bf   :  { %v831_v22 = vadd.f32 %v829_v18, %v751_v20 }
 0x1c1   :  { %832 = vst [vmem:[#allocation2] sm:$0x3] %v831_v22 }
 0x1c8   :  { %v836_v15 = vld [vmem:[#allocation2] sm:$0x3] }
 0x1c9   :  { %v837_v23 = vpack.c.bf16 %v836_v15, %v836_v15 }
 0x1cb   :  { %979 = vmatmul.mubr.bf16.vlgmr.msra.gmra.mrb[28].mxu1 %v837_v23 }
 0x29e   :  { %v980_v31 = vpop.f32.mrb[28].mxu1 }
 0x29f   :  { %v981_v32 = vadd.f32 %v980_v31, %v859_v30  ;;  %v982_v34 = vpop.f32.mrb[29].mxu1 }
 0x2a0   :  { %v983_v35 = vadd.f32 %v982_v34, %v863_v59  ;;  %v984_v37 = vpop.f32.mrb[30].mxu1 }
 0x2a1   :  { %v985_v4 = vpop.f32.mrb[31].mxu1  ;;  %v987_v55 = vmul.f32 %v981_v32, %v981_v32 }
 0x2a2   :  { %996 = vst [vmem:[#allocation10] sm:$0x3] %v983_v35 }
 0x2a3   :  { %v989_v38 = vsel %vm988_vm1, %v987_v55, 0.0 }
 0x2a4   :  { %990 = vadd.xlane.f32.xlu0 %v989_v38 }
 0x2a5   :  { %1374 = shalt.err (!%p1371_p0)
}
 0x2a6   :  { %s1375_s17 = scalar_lea.hbm %s1694_s6, 32 }
 0x2a7   :  { %p1376_p1 = scmp.ne.s32.totalorder %s1694_s6, %s1375_s17  ;;  %p1379_p2 = scmp.lt.u32.totalorder %s1375_s17, %s1694_s6 }
 0x2a9   :  { %p1381_p3 = pnand %p1379_p2, %p1376_p1 }
 0x2ab   :  { %1384 = shalt.err (!%p1381_p3)
}
 0x2ac   :  { %1016 = dma.vmem_to_hbm [thread:$0]  %s1014_s14, 32, %s1694_s6, [#allocation11]  }
 0x2ad   :  { %s1425_s23 = smov [#allocation9]  }
 0x2ae   :  { %s1003_s25 = sshll.u32 %s1425_s23, 4  ;;  %s1004_s25 = int_to_ptr.vmem [resolvable:$true] %s1003_s25 }
 0x2af   :  { %s1385_s26 = scalar_lea.vmem %s1004_s25, 32  ;;  %p1390_p5 = scmp.lt.s32.totalorder %s1004_s25, %s1004_s25 }
 0x2b0   :  { %p1386_p4 = scmp.ne.s32.totalorder %s1004_s25, %s1385_s26  ;;  %p1391_p6 = scmp.lt.s32.totalorder %s1385_s26, %s1385_s26 }
 0x2b2   :  { %p1392_p7 = por %p1391_p6, %p1390_p5 }
 0x2b4   :  { %p1393_p8 = pnand %p1392_p7, %p1386_p4 }
 0x331   :  { %v991_v39 = vpop.xlane.xlu0 %990 }
 0x332   :  { %v992_v0 = vmax.f32 %v991_v39, 1e-24 }
 0x334   :  { %1295 = vrsqrt.f32 %v992_v0 }
 0x33e   :  { %v1296_v40 = vpop.eup %1295 }
 0x33f   :  { %v994_v19 = vmul.f32 %v1296_v40, %v981_v32 }
 0x341   :  { %995 = vst [vmem:[#allocation9] sm:$0x3] %v994_v19 }
 0x342   :  { %1396 = shalt.err (!%p1393_p8)
}
 0x343   :  { %s1397_s6 = scalar_lea.hbm %s1693_s5, 32 }
 0x344   :  { %p1398_p9 = scmp.ne.s32.totalorder %s1693_s5, %s1397_s6  ;;  %p1401_p10 = scmp.lt.u32.totalorder %s1397_s6, %s1693_s5 }
 0x346   :  { %p1403_p11 = pnand %p1401_p10, %p1398_p9 }
 0x348   :  { %1406 = shalt.err (!%p1403_p11)
}
 0x349   :  { %1006 = dma.vmem_to_hbm [thread:$0]  %s1004_s25, 32, %s1693_s5, [#allocation5]  }
 0x34a   :  { %1411 = dma.done.wait [#allocation5], 32  }
 0x34b   :  { %1412 = vsyncadd [#allocation5], 4294967264 }
 0x34c   :  { %1413 = dma.done.wait [#allocation11], 32  }
 0x34d   :  { %1414 = vsyncadd [#allocation11], 4294967264 }
 0x34e   :  { %1023 = vsyncpa [#allocation4], 1 }
 0x34f   :  { %1024 = vsyncpa [#allocation7], 1 }
 0x350   :  { %1025 = vsyncpa [#allocation5], 1 }
 0x351   :  { %1026 = vsyncpa [#allocation11], 1 }

</bundles_post_ra>
